<compile_context>
chip_gen: v7x
topology: tpu7x:2x2x1
jax: 0.10.0
libtpu: 0.0.40
codegen_flags: <defaults>
</compile_context>

<pallas_src>
import functools

import jax
import jax.numpy as jnp
from jax.experimental import pallas as pl
from jax.experimental.pallas import tpu as pltpu


# ----------------------------------------------------------------------------
# Fused rollout kernel: grid step l == one predict_action call (one layer)
# ----------------------------------------------------------------------------
def _rollout_kernel(
    bn_ref,     # (B, 3)   lanes: [budget | noise_l | scale_l]   (block of (L,B,3))
    w2_ref,     # (2H, 4H) concat([weight_ih^T ; weight_hh^T])   resident in VMEM
    p_ref,      # (40,128) packed small params:
                #   row 0, 0:H   = encoder weight^T
                #   row 1, 0:H   = encoder bias
                #   row 2, :     = LSTM bias (b_ih + b_hh)
                #   row 3, 0:3   = decoder biases [mu | log_sigma | value]
                #   rows 8:8+H   = decoder weights (H,3) zero-padded to 128 lanes
    out_ref,    # (B, 128) lane-dense output slab (block of (L,B,128))
    h_scr,      # (B, H)   carried LSTM hidden state (VMEM scratch)
    c_scr,      # (B, H)   carried LSTM cell state   (VMEM scratch)
    *,
    hidden_size: int,
    batch: int,
):
    H = hidden_size
    B = batch
    l = pl.program_id(0)

    # zeros_state(): hidden starts at zero for the first prunable layer.
    @pl.when(l == 0)
    def _():
        h_scr[...] = jnp.zeros_like(h_scr)
        c_scr[...] = jnp.zeros_like(c_scr)

    budget = bn_ref[:, 0:1]                                   # (B, 1)
    noise = bn_ref[:, 1:2]                                    # (B, 1)
    scale = bn_ref[:, 2:3]                                    # (B, 1) (same value per row)

    # static_encoder: Linear(1, H) + ReLU  (outer-product broadcast, no MXU)
    enc = jnp.maximum(scale * p_ref[0:1, 0:H] + p_ref[1:2, 0:H], 0.0)  # (B, H)

    h = h_scr[...]
    c = c_scr[...]

    # static_rnn: single LSTM cell step.  Merged gate matmul:
    #   gates = [enc | h] @ [W_ih^T ; W_hh^T] + (b_ih + b_hh)      -> (B, 4H)
    zh = jnp.concatenate([enc, h], axis=1)                    # (B, 2H)
    gates = (
        jnp.dot(zh, w2_ref[...], preferred_element_type=jnp.float32)
        + p_ref[2:3, :]
    )                                                         # (B, 4H) = (B, 128)

    # Two full-width EUP passes; extract PyTorch gate order (i, f, g, o).
    sig_all = jax.nn.sigmoid(gates)
    tanh_all = jnp.tanh(gates)
    i_g = sig_all[:, 0 * H:1 * H]
    f_g = sig_all[:, 1 * H:2 * H]
    g_g = tanh_all[:, 2 * H:3 * H]
    o_g = sig_all[:, 3 * H:4 * H]
    c_new = f_g * c + i_g * g_g
    h_new = o_g * jnp.tanh(c_new)

    h_scr[...] = h_new
    c_scr[...] = c_new

    # Decoder heads in one 128-lane matmul (weights zero-padded):
    #   lane 0 = mu_raw, lane 1 = log_sigma, lane 2 = value.
    dec = (
        jnp.dot(h_new, p_ref[8:8 + H, :], preferred_element_type=jnp.float32)
        + p_ref[3:4, :]
    )                                                         # (B, 128)
    mu = dec[:, 0:1] + budget                                 # mu + budget
    sigma = jnp.exp(dec[:, 1:2])
    value = dec[:, 2:3]
    action = mu + sigma * noise                               # Normal.rsample()

    # Lane-dense output slab, written with direct lane-offset stores.
    out_ref[:, 0:1] = action
    out_ref[:, 1:2] = mu
    out_ref[:, 2:3] = sigma
    out_ref[:, 3:4] = value
    out_ref[:, 4:4 + H] = h_new
    out_ref[:, 4 + H:4 + 2 * H] = c_new
    out_ref[:, 4 + 2 * H:] = jnp.zeros((B, 128 - 4 - 2 * H), jnp.float32)


# ----------------------------------------------------------------------------
# Parameters (deterministic init, mimicking the module's __init__ tweaks)
# ----------------------------------------------------------------------------
def init_params(key, hidden_size):
    H = hidden_size
    ks = jax.random.split(key, 8)
    s = 0.1
    enc_w = jax.random.normal(ks[0], (1, H), jnp.float32) * s      # Linear(1,H).weight^T
    enc_b = jax.random.normal(ks[1], (1, H), jnp.float32) * s
    wih_t = jax.random.normal(ks[2], (H, 4 * H), jnp.float32) * s  # weight_ih_l0^T
    whh_t = jax.random.normal(ks[3], (H, 4 * H), jnp.float32) * s  # weight_hh_l0^T
    b_ih = jax.random.normal(ks[4], (1, 4 * H), jnp.float32) * s
    b_hh = jax.random.normal(ks[5], (1, 4 * H), jnp.float32) * s
    lstm_b = b_ih + b_hh

    mu_w = jax.random.normal(ks[6], (H, 1), jnp.float32) * s * 0.2  # weight *= 0.2
    mu_b = jnp.zeros((1, 1), jnp.float32)                           # bias.fill_(0.0)
    ls_w = jax.random.normal(ks[7], (H, 1), jnp.float32) * s
    ls_b = jnp.full((1, 1), -4.0, jnp.float32)                      # bias.fill_(-4.0)
    val_w = jax.random.normal(jax.random.fold_in(key, 99), (H, 1), jnp.float32) * s
    val_b = jnp.zeros((1, 1), jnp.float32)

    dec_w = jnp.concatenate([mu_w, ls_w, val_w], axis=1)            # (H, 3)
    dec_b = jnp.concatenate([mu_b, ls_b, val_b], axis=1)            # (1, 3)
    return dict(enc_w=enc_w, enc_b=enc_b, wih_t=wih_t, whh_t=whh_t,
                lstm_b=lstm_b, dec_w=dec_w, dec_b=dec_b)


def pack_params(params, hidden_size):
    """Pack params into one big LSTM-weight slab and one small (40,128) slab."""
    H = hidden_size
    assert 4 * H == 128, "packing layout assumes rnn_hidden_size == 32"
    w2 = jnp.concatenate([params['wih_t'], params['whh_t']], axis=0)  # (2H, 4H)
    p = jnp.zeros((8 + H, 128), jnp.float32)
    p = p.at[0, 0:H].set(params['enc_w'][0])
    p = p.at[1, 0:H].set(params['enc_b'][0])
    p = p.at[2, :].set(params['lstm_b'][0])
    p = p.at[3, 0:3].set(params['dec_b'][0])
    p = p.at[8:8 + H, 0:3].set(params['dec_w'])
    return w2, p


# ----------------------------------------------------------------------------
# Wrapper: the full per-layer rollout (== PPO_loss's inner predict_action loop)
# in a single pallas_call.
# ----------------------------------------------------------------------------
@functools.partial(jax.jit, static_argnames=("prunable_layers_n_channels", "hidden_size"))
def rollout(params, budget, noise, prunable_layers_n_channels, hidden_size):
    H = hidden_size
    L = len(prunable_layers_n_channels)
    B = budget.shape[0]
    max_ch = max(prunable_layers_n_channels)
    scales = jnp.asarray(
        [ch / max_ch for ch in prunable_layers_n_channels], jnp.float32)   # (L,)

    w2, p_small = pack_params(params, H)

    # Per-step small inputs packed together: [budget | noise_l | scale_l].
    bn = jnp.concatenate([
        jnp.broadcast_to(budget[None, :, :], (L, B, 1)),
        noise,
        jnp.broadcast_to(scales[:, None, None], (L, B, 1)),
    ], axis=-1)                                                            # (L, B, 3)

    grid_spec = pltpu.PrefetchScalarGridSpec(
        num_scalar_prefetch=0,
        grid=(L,),
        in_specs=[
            pl.BlockSpec((None, B, 3), lambda l: (l, 0, 0)),      # bn, per-layer block
            pl.BlockSpec((2 * H, 4 * H), lambda l: (0, 0)),       # LSTM weights, resident
            pl.BlockSpec((8 + H, 128), lambda l: (0, 0)),         # small-param slab, resident
        ],
        out_specs=pl.BlockSpec((None, B, 128), lambda l: (l, 0, 0)),
        scratch_shapes=[
            pltpu.VMEM((B, H), jnp.float32),   # carried h
            pltpu.VMEM((B, H), jnp.float32),   # carried c
        ],
    )

    out = pl.pallas_call(
        functools.partial(_rollout_kernel, hidden_size=H, batch=B),
        grid_spec=grid_spec,
        out_shape=jax.ShapeDtypeStruct((L, B, 128), jnp.float32),
        compiler_params=pltpu.CompilerParams(
            # The recurrence over layers is serial -> "arbitrary".
            # TODO(synk): on v7x (2 TCs) independent rollouts / batch halves could be
            # sharded across cores with a leading "parallel" axis if B grows.
            dimension_semantics=("arbitrary",)),
    )(bn, w2, p_small)

    actions = out[:, :, 0:1]
    mus = out[:, :, 1:2]
    sigmas = out[:, :, 2:3]
    values = out[:, :, 3:4]
    h_final = out[-1, :, 4:4 + H]
    c_final = out[-1, :, 4 + H:4 + 2 * H]
    return actions, mus, sigmas, values, (h_final, c_final)


# Pure-JAX reference rollout (calls the per-step math exactly like the module).
def rollout_ref(params, budget, noise, prunable_layers_n_channels, hidden_size):
    H = hidden_size
    B = budget.shape[0]
    max_ch = max(prunable_layers_n_channels)
    h = jnp.zeros((B, H), jnp.float32)
    c = jnp.zeros((B, H), jnp.float32)
    acts, mus, sgs, vals = [], [], [], []
    for li, ch in enumerate(prunable_layers_n_channels):
        x = jnp.ones((B, 1), jnp.float32) * (ch / max_ch)
        enc = jnp.maximum(x @ params['enc_w'] + params['enc_b'], 0.0)
        gates = enc @ params['wih_t'] + h @ params['whh_t'] + params['lstm_b']
        i_g = jax.nn.sigmoid(gates[:, 0 * H:1 * H])
        f_g = jax.nn.sigmoid(gates[:, 1 * H:2 * H])
        g_g = jnp.tanh(gates[:, 2 * H:3 * H])
        o_g = jax.nn.sigmoid(gates[:, 3 * H:4 * H])
        c = f_g * c + i_g * g_g
        h = o_g * jnp.tanh(c)
        dec = h @ params['dec_w'] + params['dec_b']
        mu = dec[:, 0:1] + budget
        sigma = jnp.exp(dec[:, 1:2])
        value = dec[:, 2:3]
        action = mu + sigma * noise[li]
        acts.append(action); mus.append(mu); sgs.append(sigma); vals.append(value)
    return (jnp.stack(acts), jnp.stack(mus), jnp.stack(sgs), jnp.stack(vals), (h, c))


if __name__ == "__main__":
    B, H = 8, 32
    prunable_layers_n_channels = (16, 32, 64, 64)   # synthetic prunable-layer widths
    L = len(prunable_layers_n_channels)

    key = jax.random.PRNGKey(0)
    k_params, k_budget, k_noise = jax.random.split(key, 3)
    params = init_params(k_params, H)

    budget = jax.random.uniform(k_budget, (B, 1), jnp.float32, 0.3, 0.9)
    noise = jax.random.normal(k_noise, (L, B, 1), jnp.float32)   # rsample eps per step

    acts, mus, sigmas, values, (h_f, c_f) = rollout(
        params, budget, noise, prunable_layers_n_channels, H)
    jax.block_until_ready(acts)

    acts_r, mus_r, sgs_r, vals_r, (h_r, c_r) = rollout_ref(
        params, budget, noise, prunable_layers_n_channels, H)

    assert jnp.allclose(acts, acts_r, atol=1e-4, rtol=1e-4)
    assert jnp.allclose(mus, mus_r, atol=1e-4, rtol=1e-4)
    assert jnp.allclose(sigmas, sgs_r, atol=1e-4, rtol=1e-4)
    assert jnp.allclose(values, vals_r, atol=1e-4, rtol=1e-4)
    assert jnp.allclose(h_f, h_r, atol=1e-4, rtol=1e-4)
    assert jnp.allclose(c_f, c_r, atol=1e-4, rtol=1e-4)

    print("KERNEL_OK")
</pallas_src>

<mosaic_0001>
module attributes {stable_mosaic.version = 11 : i64} {
  func.func @_rollout_kernel(%arg0: i32, %arg1: memref<1x8x3xf32, #tpu.memory_space<vmem>>, %arg2: memref<64x128xf32, #tpu.memory_space<vmem>>, %arg3: memref<40x128xf32, #tpu.memory_space<vmem>>, %arg4: memref<1x8x128xf32, #tpu.memory_space<vmem>>, %arg5: memref<8x32xf32, #tpu.memory_space<vmem>>, %arg6: memref<8x32xf32, #tpu.memory_space<vmem>>) attributes {dimension_semantics = [#tpu.dimension_semantics<arbitrary>], iteration_bounds = array<i64: 4>, scalar_prefetch = 0 : i64, scratch_operands = 2 : i64, tpu.core_type = #tpu.core_type<tc>, window_params = [{transform_indices = @transform_0, window_bounds = array<i64: 1, 8, 3>}, {pipeline_mode = #tpu.pipeline_mode<synchronous>, transform_indices = @transform_1, window_bounds = array<i64: 64, 128>}, {pipeline_mode = #tpu.pipeline_mode<synchronous>, transform_indices = @transform_2, window_bounds = array<i64: 40, 128>}, {transform_indices = @transform_3, window_bounds = array<i64: 1, 8, 128>}]} {
    %c0_i32 = arith.constant 0 : i32
    %0 = arith.cmpi eq, %arg0, %c0_i32 : i32
    %1 = arith.extui %0 : i1 to i32
    %c0_i32_0 = arith.constant 0 : i32
    %2 = arith.cmpi ne, %1, %c0_i32_0 : i32
    scf.if %2 {
      %cst_47 = arith.constant 0.000000e+00 : f32
      %77 = vector.broadcast %cst_47 : f32 to vector<8x32xf32>
      %c0_48 = arith.constant 0 : index
      %c0_49 = arith.constant 0 : index
      %78 = vector.load %arg5[%c0_48, %c0_49] : memref<8x32xf32, #tpu.memory_space<vmem>>, vector<8x32xf32>
      tpu.vector_store %arg5[%c0_48, %c0_49], %77 {strides = array<i32>} : memref<8x32xf32, #tpu.memory_space<vmem>>, vector<8x32xf32>,
      %cst_50 = arith.constant 0.000000e+00 : f32
      %79 = vector.broadcast %cst_50 : f32 to vector<8x32xf32>
      %c0_51 = arith.constant 0 : index
      %c0_52 = arith.constant 0 : index
      %80 = vector.load %arg6[%c0_51, %c0_52] : memref<8x32xf32, #tpu.memory_space<vmem>>, vector<8x32xf32>
      tpu.vector_store %arg6[%c0_51, %c0_52], %79 {strides = array<i32>} : memref<8x32xf32, #tpu.memory_space<vmem>>, vector<8x32xf32>,
    } else {
    }
    %c0 = arith.constant 0 : index
    %c0_1 = arith.constant 0 : index
    %c0_2 = arith.constant 0 : index
    %3 = vector.load %arg1[%c0, %c0_1, %c0_2] : memref<1x8x3xf32, #tpu.memory_space<vmem>>, vector<1x8x1xf32>
    %4 = vector.shape_cast %3 : vector<1x8x1xf32> to vector<8x1xf32>
    %c0_3 = arith.constant 0 : index
    %c0_4 = arith.constant 0 : index
    %c1 = arith.constant 1 : index
    %5 = vector.load %arg1[%c0_3, %c0_4, %c1] : memref<1x8x3xf32, #tpu.memory_space<vmem>>, vector<1x8x1xf32>
    %6 = vector.shape_cast %5 : vector<1x8x1xf32> to vector<8x1xf32>
    %c0_5 = arith.constant 0 : index
    %c0_6 = arith.constant 0 : index
    %c2 = arith.constant 2 : index
    %7 = vector.load %arg1[%c0_5, %c0_6, %c2] : memref<1x8x3xf32, #tpu.memory_space<vmem>>, vector<1x8x1xf32>
    %8 = vector.shape_cast %7 : vector<1x8x1xf32> to vector<8x1xf32>
    %c0_7 = arith.constant 0 : index
    %c0_8 = arith.constant 0 : index
    %9 = vector.load %arg3[%c0_7, %c0_8] : memref<40x128xf32, #tpu.memory_space<vmem>>, vector<1x32xf32>
    %10 = vector.broadcast %8 : vector<8x1xf32> to vector<8x32xf32>
    %11 = vector.broadcast %9 : vector<1x32xf32> to vector<8x32xf32>
    %12 = arith.mulf %10, %11 : vector<8x32xf32>
    %c1_9 = arith.constant 1 : index
    %c0_10 = arith.constant 0 : index
    %13 = vector.load %arg3[%c1_9, %c0_10] : memref<40x128xf32, #tpu.memory_space<vmem>>, vector<1x32xf32>
    %14 = vector.broadcast %13 : vector<1x32xf32> to vector<8x32xf32>
    %15 = arith.addf %12, %14 : vector<8x32xf32>
    %cst = arith.constant 0.000000e+00 : f32
    %16 = vector.broadcast %cst : f32 to vector<8x32xf32>
    %17 = arith.maximumf %15, %16 : vector<8x32xf32>
    %c0_11 = arith.constant 0 : index
    %c0_12 = arith.constant 0 : index
    %18 = vector.load %arg5[%c0_11, %c0_12] : memref<8x32xf32, #tpu.memory_space<vmem>>, vector<8x32xf32>
    %c0_13 = arith.constant 0 : index
    %c0_14 = arith.constant 0 : index
    %19 = vector.load %arg6[%c0_13, %c0_14] : memref<8x32xf32, #tpu.memory_space<vmem>>, vector<8x32xf32>
    %20 = tpu.concatenate %17, %18 in 1 : vector<8x32xf32>, vector<8x32xf32> -> vector<8x64xf32>
    %c0_15 = arith.constant 0 : index
    %c0_16 = arith.constant 0 : index
    %21 = vector.load %arg2[%c0_15, %c0_16] : memref<64x128xf32, #tpu.memory_space<vmem>>, vector<64x128xf32>
    %cst_17 = arith.constant dense<0.000000e+00> : vector<8x128xf32>
    %22 = tpu.matmul %20, %21, %cst_17 {dimension_numbers = #tpu.dot_dimension_numbers<[1], [0], [0], [1], [0, 0, 1, 1], [], []>} : vector<8x64xf32>, vector<64x128xf32>, vector<8x128xf32> -> vector<8x128xf32>
    %c2_18 = arith.constant 2 : index
    %c0_19 = arith.constant 0 : index
    %23 = vector.load %arg3[%c2_18, %c0_19] : memref<40x128xf32, #tpu.memory_space<vmem>>, vector<1x128xf32>
    %24 = vector.broadcast %23 : vector<1x128xf32> to vector<8x128xf32>
    %25 = arith.addf %22, %24 : vector<8x128xf32>
    %26 = arith.negf %25 : vector<8x128xf32>
    %27 = math.exp %26 : vector<8x128xf32>
    %cst_20 = arith.constant 1.000000e+00 : f32
    %28 = vector.broadcast %cst_20 : f32 to vector<8x128xf32>
    %29 = arith.addf %28, %27 : vector<8x128xf32>
    %30 = arith.divf %28, %29 : vector<8x128xf32>
    %31 = math.tanh %25 : vector<8x128xf32>
    %32 = vector.extract_strided_slice %30 {offsets = [0, 0], sizes = [8, 32], strides = [1, 1]} : vector<8x128xf32> to vector<8x32xf32>
    %33 = vector.extract_strided_slice %30 {offsets = [0, 32], sizes = [8, 32], strides = [1, 1]} : vector<8x128xf32> to vector<8x32xf32>
    %34 = vector.extract_strided_slice %31 {offsets = [0, 64], sizes = [8, 32], strides = [1, 1]} : vector<8x128xf32> to vector<8x32xf32>
    %35 = vector.extract_strided_slice %30 {offsets = [0, 96], sizes = [8, 32], strides = [1, 1]} : vector<8x128xf32> to vector<8x32xf32>
    %36 = arith.mulf %33, %19 : vector<8x32xf32>
    %37 = arith.mulf %32, %34 : vector<8x32xf32>
    %38 = arith.addf %36, %37 : vector<8x32xf32>
    %39 = math.tanh %38 : vector<8x32xf32>
    %40 = arith.mulf %35, %39 : vector<8x32xf32>
    %c0_21 = arith.constant 0 : index
    %c0_22 = arith.constant 0 : index
    %41 = vector.load %arg5[%c0_21, %c0_22] : memref<8x32xf32, #tpu.memory_space<vmem>>, vector<8x32xf32>
    tpu.vector_store %arg5[%c0_21, %c0_22], %40 {strides = array<i32>} : memref<8x32xf32, #tpu.memory_space<vmem>>, vector<8x32xf32>,
    %c0_23 = arith.constant 0 : index
    %c0_24 = arith.constant 0 : index
    %42 = vector.load %arg6[%c0_23, %c0_24] : memref<8x32xf32, #tpu.memory_space<vmem>>, vector<8x32xf32>
    tpu.vector_store %arg6[%c0_23, %c0_24], %38 {strides = array<i32>} : memref<8x32xf32, #tpu.memory_space<vmem>>, vector<8x32xf32>,
    %c8 = arith.constant 8 : index
    %c0_25 = arith.constant 0 : index
    %43 = vector.load %arg3[%c8, %c0_25] : memref<40x128xf32, #tpu.memory_space<vmem>>, vector<32x128xf32>
    %cst_26 = arith.constant dense<0.000000e+00> : vector<8x128xf32>
    %44 = tpu.matmul %40, %43, %cst_26 {dimension_numbers = #tpu.dot_dimension_numbers<[1], [0], [0], [1], [0, 0, 1, 1], [], []>} : vector<8x32xf32>, vector<32x128xf32>, vector<8x128xf32> -> vector<8x128xf32>
    %c3 = arith.constant 3 : index
    %c0_27 = arith.constant 0 : index
    %45 = vector.load %arg3[%c3, %c0_27] : memref<40x128xf32, #tpu.memory_space<vmem>>, vector<1x128xf32>
    %46 = vector.broadcast %45 : vector<1x128xf32> to vector<8x128xf32>
    %47 = arith.addf %44, %46 : vector<8x128xf32>
    %48 = vector.extract_strided_slice %47 {offsets = [0, 0], sizes = [8, 1], strides = [1, 1]} : vector<8x128xf32> to vector<8x1xf32>
    %49 = arith.addf %48, %4 : vector<8x1xf32>
    %50 = vector.extract_strided_slice %47 {offsets = [0, 1], sizes = [8, 1], strides = [1, 1]} : vector<8x128xf32> to vector<8x1xf32>
    %51 = math.exp %50 : vector<8x1xf32>
    %52 = vector.extract_strided_slice %47 {offsets = [0, 2], sizes = [8, 1], strides = [1, 1]} : vector<8x128xf32> to vector<8x1xf32>
    %53 = arith.mulf %51, %6 : vector<8x1xf32>
    %54 = arith.addf %49, %53 : vector<8x1xf32>
    %c0_28 = arith.constant 0 : index
    %c0_29 = arith.constant 0 : index
    %c0_30 = arith.constant 0 : index
    %55 = vector.load %arg4[%c0_28, %c0_29, %c0_30] : memref<1x8x128xf32, #tpu.memory_space<vmem>>, vector<1x8x1xf32>
    %56 = vector.shape_cast %55 : vector<1x8x1xf32> to vector<8x1xf32>
    %57 = vector.shape_cast %54 : vector<8x1xf32> to vector<1x8x1xf32>
    tpu.vector_store %arg4[%c0_28, %c0_29, %c0_30], %57 {strides = array<i32>} : memref<1x8x128xf32, #tpu.memory_space<vmem>>, vector<1x8x1xf32>,
    %c0_31 = arith.constant 0 : index
    %c0_32 = arith.constant 0 : index
    %c1_33 = arith.constant 1 : index
    %58 = vector.load %arg4[%c0_31, %c0_32, %c1_33] : memref<1x8x128xf32, #tpu.memory_space<vmem>>, vector<1x8x1xf32>
    %59 = vector.shape_cast %58 : vector<1x8x1xf32> to vector<8x1xf32>
    %60 = vector.shape_cast %49 : vector<8x1xf32> to vector<1x8x1xf32>
    tpu.vector_store %arg4[%c0_31, %c0_32, %c1_33], %60 {strides = array<i32>} : memref<1x8x128xf32, #tpu.memory_space<vmem>>, vector<1x8x1xf32>,
    %c0_34 = arith.constant 0 : index
    %c0_35 = arith.constant 0 : index
    %c2_36 = arith.constant 2 : index
    %61 = vector.load %arg4[%c0_34, %c0_35, %c2_36] : memref<1x8x128xf32, #tpu.memory_space<vmem>>, vector<1x8x1xf32>
    %62 = vector.shape_cast %61 : vector<1x8x1xf32> to vector<8x1xf32>
    %63 = vector.shape_cast %51 : vector<8x1xf32> to vector<1x8x1xf32>
    tpu.vector_store %arg4[%c0_34, %c0_35, %c2_36], %63 {strides = array<i32>} : memref<1x8x128xf32, #tpu.memory_space<vmem>>, vector<1x8x1xf32>,
    %c0_37 = arith.constant 0 : index
    %c0_38 = arith.constant 0 : index
    %c3_39 = arith.constant 3 : index
    %64 = vector.load %arg4[%c0_37, %c0_38, %c3_39] : memref<1x8x128xf32, #tpu.memory_space<vmem>>, vector<1x8x1xf32>
    %65 = vector.shape_cast %64 : vector<1x8x1xf32> to vector<8x1xf32>
    %66 = vector.shape_cast %52 : vector<8x1xf32> to vector<1x8x1xf32>
    tpu.vector_store %arg4[%c0_37, %c0_38, %c3_39], %66 {strides = array<i32>} : memref<1x8x128xf32, #tpu.memory_space<vmem>>, vector<1x8x1xf32>,
    %c0_40 = arith.constant 0 : index
    %c0_41 = arith.constant 0 : index
    %c4 = arith.constant 4 : index
    %67 = vector.load %arg4[%c0_40, %c0_41, %c4] : memref<1x8x128xf32, #tpu.memory_space<vmem>>, vector<1x8x32xf32>
    %68 = vector.shape_cast %67 : vector<1x8x32xf32> to vector<8x32xf32>
    %69 = vector.shape_cast %40 : vector<8x32xf32> to vector<1x8x32xf32>
    tpu.vector_store %arg4[%c0_40, %c0_41, %c4], %69 {strides = array<i32>} : memref<1x8x128xf32, #tpu.memory_space<vmem>>, vector<1x8x32xf32>,
    %c0_42 = arith.constant 0 : index
    %c0_43 = arith.constant 0 : index
    %c36 = arith.constant 36 : index
    %70 = vector.load %arg4[%c0_42, %c0_43, %c36] : memref<1x8x128xf32, #tpu.memory_space<vmem>>, vector<1x8x32xf32>
    %71 = vector.shape_cast %70 : vector<1x8x32xf32> to vector<8x32xf32>
    %72 = vector.shape_cast %38 : vector<8x32xf32> to vector<1x8x32xf32>
    tpu.vector_store %arg4[%c0_42, %c0_43, %c36], %72 {strides = array<i32>} : memref<1x8x128xf32, #tpu.memory_space<vmem>>, vector<1x8x32xf32>,
    %cst_44 = arith.constant 0.000000e+00 : f32
    %73 = vector.broadcast %cst_44 : f32 to vector<8x60xf32>
    %c0_45 = arith.constant 0 : index
    %c0_46 = arith.constant 0 : index
    %c68 = arith.constant 68 : index
    %74 = vector.load %arg4[%c0_45, %c0_46, %c68] : memref<1x8x128xf32, #tpu.memory_space<vmem>>, vector<1x8x60xf32>
    %75 = vector.shape_cast %74 : vector<1x8x60xf32> to vector<8x60xf32>
    %76 = vector.shape_cast %73 : vector<8x60xf32> to vector<1x8x60xf32>
    tpu.vector_store %arg4[%c0_45, %c0_46, %c68], %76 {strides = array<i32>} : memref<1x8x128xf32, #tpu.memory_space<vmem>>, vector<1x8x60xf32>,
    return
  }
  func.func @transform_0(%arg0: i32) -> (i32, i32, i32) {
    %c0_i32 = arith.constant 0 : i32
    %c0_i32_0 = arith.constant 0 : i32
    %c0_i32_1 = arith.constant 0 : i32
    return %arg0, %c0_i32, %c0_i32_0 : i32, i32, i32
  }
  func.func @transform_1(%arg0: i32) -> (i32, i32) {
    %c0_i32 = arith.constant 0 : i32
    %c0_i32_0 = arith.constant 0 : i32
    %c0_i32_1 = arith.constant 0 : i32
    return %c0_i32, %c0_i32_0 : i32, i32
  }
  func.func @transform_2(%arg0: i32) -> (i32, i32) {
    %c0_i32 = arith.constant 0 : i32
    %c0_i32_0 = arith.constant 0 : i32
    %c0_i32_1 = arith.constant 0 : i32
    return %c0_i32, %c0_i32_0 : i32, i32
  }
  func.func @transform_3(%arg0: i32) -> (i32, i32, i32) {
    %c0_i32 = arith.constant 0 : i32
    %c0_i32_0 = arith.constant 0 : i32
    %c0_i32_1 = arith.constant 0 : i32
    return %arg0, %c0_i32, %c0_i32_0 : i32, i32, i32
  }
}

</mosaic_0001>

<bundles_post_ra>
// kernel: rollout.1
= control target key start
LH: loop header
LB: loop body
LE: loop exit
PB: predicated region body
PF: predicated region fallthrough
CT: control target
= control target key end

     0   :  { %s650_s12 = smov 0   ;;  %s746_s0 = inlined_call_operand.vmem [shape: f32[4,8,3], index: 0, kind: input, shape index: {}]   ;;  %s747_s1 = inlined_call_operand.vmem [shape: f32[64,128], index: 1, kind: input, shape index: {}]   ;;  %s748_s2 = inlined_call_operand.vmem [shape: f32[40,128], index: 2, kind: input, shape index: {}]   ;;  %s749_s3 = inlined_call_operand.vmem [shape: f32[4,8,128], index: 3, kind: output, shape index: {}]  }
   0x1 LB: > { %s500_s13 = sadd.s32 4294967295, %s616_s12   ;;  %p504_p0 = scmp.ge.s32.totalorder %s616_s12, 1  ;;  %s616_s12 = sphi %s650_s12, %s13_s12  }
   0x2   : > { %p136_p1 = scmp.lt.s32.totalorder %s616_s12, 5 }
   0x4   : > { %p137_p2 = pnand %p504_p0, %p136_p1 }
   0x5   : > { %p158_p3 = scmp.lt.s32.totalorder (!%p137_p2), %s500_s13, 3  ;;  %p507_p4 = scmp.ne.s32.totalorder (!%p137_p2), %s500_s13, 0 }
   0x6   : > { %140 = sbr.rel (%p137_p2) target bundleno = 1216 (0x4c0), region = 32 }
   0xd   : > { %s159_s14 = scalar_select %p158_p3, %s500_s13, 3 }
   0xe   : > { %169 = sbr.rel (%p507_p4) target bundleno = 21 (0x15), region = 36  ;;  %vm170_vm0 = vcmask (!%p507_p4), 261120   ;;  %v618_v0 = vmov (!%p507_p4), 0.0  }
   0xf   : > { %s505_s15 = sshll.u32 %s159_s14, 3  ;;  %171 = vst.msk [vmem:[#allocation2] sm:$0xff] (!%p507_p4), %vm170_vm0, %v618_v0  ;;  %172 = vst.msk [vmem:[#allocation3] sm:$0xff] (!%p507_p4), %vm170_vm0, %v618_v0 }
  0x10   : > { %s161_s18 = scalar_lea.vmem %s746_s0, %s505_s15  ;;  %s664_s21 = scalar_lea.vmem %s749_s3, %s505_s15 }
  0x15 PF: > { %v666_v1 = vld [vmem:[%s161_s18] sm:$0xff]  ;;  %v619_v3 = vmov 2   ;;  %v620_v4 = vmov 0.0|0.0   ;;  %v201_v5 = vld [vmem:[%s747_s1 + $0x8] sm:$0xff]  ;;  %v202_v6 = vld [vmem:[%s747_s1 + $0x10] sm:$0xff]  ;;  %s621_s7 = smov 32  }
  0x16   : > { %v200_v2 = vld [vmem:[%s747_s1] sm:$0xff]  ;;  %599 = vset.pattern.permute.xlu0 %v619_v3  ;;  %561 = vmatprep.subr.bf16.mxu0 %v620_v4  ;;  %v203_v7 = vld [vmem:[%s747_s1 + $0x18] sm:$0xff]  ;;  %v205_v12 = vld [vmem:[%s747_s1 + $0x28] sm:$0xff]  ;;  %vm622_vm1 = vmmov 0   ;;  %v623_v14 = vmov 0.0   ;;  %vm198_vm2 = vcmask 261120  }
  0x17   : > { %177 = vperm.xlu0 %599, %v666_v1   ;;  %v562_v8 = vpack.c.bf16 %v201_v5, %v200_v2  ;;  %573 = vmatprep.subr.bf16.mxu1 %v620_v4  ;;  %v192_v9 = vld [vmem:[#allocation2] sm:$0xff]  ;;  %v565_v10 = vpack.c.bf16 %v203_v7, %v202_v6  ;;  %v206_v15 = vld [vmem:[%s747_s1 + $0x30] sm:$0xff]  ;;  %v207_v16 = vld [vmem:[%s747_s1 + $0x38] sm:$0xff]  ;;  %vm213_vm3 = vcmask 523264   ;;  %s624_s19 = smov 64   ;;  %s625_s4 = smov 1  }
  0x18   : > { %v204_v11 = vld [vmem:[%s747_s1 + $0x20] sm:$0xff]  ;;  %547 = vmatprep.mubr.msk.f32.mxu0 %vm622_vm1, %v623_v14  ;;  %558 = vmatprep.mubr.msk.f32.mxu1 %vm622_vm1, %v623_v14  ;;  %v571_v17 = vpack.c.bf16 %v207_v16, %v206_v15  ;;  %v193_v31 = vld [vmem:[#allocation3] sm:$0xff]  ;;  %v326_v43 = vld [vmem:[%s748_s2 + $0x10] sm:$0xff]  ;;  %s626_s5 = smov 4   ;;  %s627_s6 = smov 127   ;;  %vm415_vm4 = vcmask 7168  }
  0x19   : > { %563 = vmatpush3.bf16.msra.mxu0 %v562_v8  ;;  %v568_v13 = vpack.c.bf16 %v205_v12, %v204_v11  ;;  %v508_v18 = vld [vmem:[%s748_s2] ss:$0 sm:$0xff]  ;;  %v509_v19 = vld [vmem:[%s748_s2 + $0x1] ss:$0 sm:$0xff]  ;;  %v510_v26 = vld [vmem:[%s748_s2 + $0x2] ss:$0 sm:$0xff] }
  0x1a   : > { %564 = vmatprep.subr.bf16.mxu0 %v620_v4  ;;  %v325_v42 = vld [vmem:[%s748_s2 + $0x8] sm:$0xff]  ;;  %v327_v44 = vld [vmem:[%s748_s2 + $0x18] sm:$0xff]  ;;  %v328_v46 = vld [vmem:[%s748_s2 + $0x20] sm:$0xff]  ;;  %s629_s8 = smov 96   ;;  %vm421_vm5 = vcmask 15368   ;;  %vm427_vm6 = vcmask 23568  }
  0x1b   : > { %195 = vrot.lane.b32.xlu0 %v192_v9, %s621_s7  ;;  %v574_v45 = vpack.c.bf16 %v326_v43, %v325_v42  ;;  %v577_v47 = vpack.c.bf16 %v328_v46, %v327_v44  ;;  %v513_v52 = vld [vmem:[%s748_s2 + $0x3] ss:$0 sm:$0xff]  ;;  %vm433_vm7 = vcmask 31768   ;;  %vm438_vm8 = vcmask 293920  }
  0x1c   : > { %vm443_vm9 = vcmask 556320   ;;  %vm445_vm10 = vcmask 1048096  }
  0x1d   : > { %566 = vmatpush3.bf16.msra.mxu0 %v565_v10  ;;  %575 = vmatpush3.bf16.msra.mxu1 %v574_v45 }
  0x1e   : > { %567 = vmatprep.subr.bf16.mxu0 %v620_v4  ;;  %576 = vmatprep.subr.bf16.mxu1 %v620_v4 }
  0x21   : > { %569 = vmatpush3.bf16.msra.mxu0 %v568_v13  ;;  %578 = vmatpush3.bf16.msra.mxu1 %v577_v47 }
  0x22   : > { %570 = vmatprep.subr.bf16.mxu0 %v620_v4 }
  0x25   : > { %572 = vmatpush3.bf16.msra.mxu0 %v571_v17 }
  0x96   : > { %v178_v20 = vpop.permute.xlu0 %177 }
  0x97   : > { %v184_v21 = vmul.f32 %v508_v18, %v178_v20 }
  0x99   : > { %v190_v22 = vadd.f32 %v509_v19, %v184_v21 }
  0x9a   : > { %v196_v23 = vpop.permute.xlu0 %195 }
  0x9b   : > { %v191_v24 = vmax.f32 %v190_v22, 0.0 }
  0x9d   : > { %v199_v25 = vsel %vm198_vm2, %v191_v24, %v196_v23 }
  0x9e   : > { %548 = vmatmul.mubr.msk.f32.vlgmr.msra.gmra.mrb[0].mxu0 %vm213_vm3, %v199_v25 }
 0x171   : > { %v283_v27 = vpop.f32.mrb[0].mxu0 }
 0x172   : > { %v284_v28 = vadd.f32 %v510_v26, %v283_v27  ;;  %v549_v29 = vpop.f32.mrb[1].mxu0 }
 0x174   : > { %600 = vtanh.f32 %v284_v28  ;;  %v512_v32 = vmul.f32 -1.442695, %v284_v28 }
 0x176   : > { %602 = vpow2.f32 %v512_v32 }
 0x17e   : > { %v601_v30 = vpop.eup %600 }
 0x17f   : > { %300 = vrot.lane.b32.xlu1 %v601_v30, %s624_s19 }
 0x180   : > { %v603_v33 = vpop.eup %602 }
 0x181   : > { %v290_v34 = vadd.f32 1.0, %v603_v33 }
 0x183   : > { %295 = vrot.lane.b32.xlu1 %v193_v31, %s621_s7  ;;  %604 = vrcp.f32 %v290_v34 }
 0x18d   : > { %v605_v35 = vpop.eup %604 }
 0x1f1   : > { %v301_v36 = vpop.permute.xlu1 %300 }
 0x1f2   : > { %v303_v37 = vmul.f32 %v605_v35, %v301_v36 }
 0x1f4   : > { %305 = vrot.lane.b32.xlu0 %v303_v37, %s621_s7 }
 0x1f5   : > { %v296_v38 = vpop.permute.xlu1 %295 }
 0x1f6   : > { %v298_v39 = vmul.f32 %v605_v35, %v296_v38 }
 0x266   : > { %v306_v40 = vpop.permute.xlu0 %305 }
 0x267   : > { %v308_v41 = vadd.f32 %v306_v40, %v298_v39 }
 0x269   : > { %606 = vtanh.f32 %v308_v41 }
 0x273   : > { %v607_v48 = vpop.eup %606 }
 0x274   : > { %311 = vrot.lane.b32.xlu1 %v607_v48, %s624_s19 }
 0x2e6   : > { %v312_v49 = vpop.permute.xlu1 %311 }
 0x2e7   : > { %v314_v50 = vmul.f32 %v605_v35, %v312_v49 }
 0x2e9   : > { %316 = vrot.lane.b32.xlu0 %v314_v50, %s621_s7  ;;  %s628_s7 = smov 36  }
 0x35b   : > { %v317_v51 = vpop.permute.xlu0 %316 }
 0x35c   : > { %319 = vst.msk [vmem:[#allocation2] sm:$0xff] %vm198_vm2, %v317_v51  ;;  %559 = vmatmul.mubr.msk.f32.vlgmr.msra.gmra.mrb[0].mxu1 %vm198_vm2, %v317_v51 }
 0x42f   : > { %v402_v53 = vpop.f32.mrb[0].mxu1 }
 0x430   : > { %v403_v54 = vadd.f32 %v513_v52, %v402_v53  ;;  %v560_v55 = vpop.f32.mrb[1].mxu1 }
 0x432   : > { %v407_v56 = vmul.f32 1.442695, %v403_v54  ;;  %430 = vrot.lane.b32.xlu0 %v403_v54, %s625_s4  ;;  %v406_v57 = vadd.f32 %v403_v54, %v666_v1 }
 0x434   : > { %608 = vpow2.f32 %v407_v56 }
 0x436   : > { %418 = vrot.lane.b32.xlu0 %v406_v57, %s625_s4 }
 0x43a   : > { %440 = vrot.lane.b32.xlu0 %v308_v41, %s626_s5 }
 0x43e   : > { %v609_v58 = vpop.eup %608 }
 0x43f   : > { %424 = vrot.lane.b32.xlu1 %v609_v58, %s625_s4  ;;  %v409_v59 = vmul.f32 %v609_v58, %v666_v1 }
 0x443   : > { %411 = vrot.lane.b32.xlu1 %v409_v59, %s627_s6 }
 0x447   : > { %435 = vrot.lane.b32.xlu1 %v314_v50, %s628_s7 }
 0x44b   : > { %321 = vrot.lane.b32.xlu1 %v308_v41, %s629_s8 }
 0x4a4   : > { %v431_v60 = vpop.permute.xlu0 %430 }
 0x4a8   : > { %v419_v63 = vpop.permute.xlu0 %418 }
 0x4ac   : > { %v441_v2 = vpop.permute.xlu0 %440 }
 0x4b1   : > { %v425_v61 = vpop.permute.xlu1 %424 }
 0x4b5   : > { %v412_v62 = vpop.permute.xlu1 %411 }
 0x4b6   : > { %v414_v0 = vadd.f32 %v412_v62, %v406_v57 }
 0x4b8   : > { %416 = vst.msk [vmem:[%s664_s21] sm:$0xff] %vm415_vm4, %v414_v0 }
 0x4b9   : > { %422 = vst.msk [vmem:[%s664_s21] sm:$0xff] %vm421_vm5, %v419_v63  ;;  %v436_v1 = vpop.permute.xlu1 %435 }
 0x4ba   : > { %428 = vst.msk [vmem:[%s664_s21] sm:$0xff] %vm427_vm6, %v425_v61 }
 0x4bb   : > { %434 = vst.msk [vmem:[%s664_s21] sm:$0xff] %vm433_vm7, %v431_v60 }
 0x4bc   : > { %439 = vst.msk [vmem:[%s664_s21] sm:$0xff] %vm438_vm8, %v436_v1 }
 0x4bd   : > { %444 = vst.msk [vmem:[%s664_s21] sm:$0xff] %vm443_vm9, %v441_v2  ;;  %v322_v3 = vpop.permute.xlu1 %321 }
 0x4be   : > { %446 = vst.msk [vmem:[%s664_s21] sm:$0xff] %vm445_vm10, %v623_v14 }
 0x4bf   : > { %324 = vst.msk [vmem:[#allocation3] sm:$0xff] %vm198_vm2, %v322_v3 }
 0x4c0 PF: > { %s13_s12 = sadd.s32 1, %s616_s12  }
 0x4c1   : > { %p10_p5 = scmp.ge.s32.totalorder %s13_s12, 6  }
 0x4c3   :  { %12 = sbr.rel (!%p10_p5) target bundleno = 1 (0x1), region = 66 }

</bundles_post_ra>
